<compile_context>
chip_gen: v6e
topology: v6e:2x2x1
jax: 0.10.0
libtpu: 0.0.40
codegen_flags: <defaults>
</compile_context>

<pallas_src>
import math

import jax
import jax.numpy as jnp
from jax.experimental import pallas as pl
from jax.experimental.pallas import tpu as pltpu

BN_EPS = 1e-5
LANES = 128
NEG_INF = -1e30


def _round_up(n, m):
    return ((n + m - 1) // m) * m


# ---------------------------------------------------------------------------
# Kernels
# ---------------------------------------------------------------------------
def _bn_block(x_ref, w_bn_ref, bn_aff_ref):
    """bn_linear (bias-free: cancelled by BN) + BatchNorm1d with batch stats.

    x is cast to bf16 in-kernel (MXU operand); stats / normalization in f32.
    """
    x = x_ref[...].astype(jnp.bfloat16)
    h = jnp.dot(x, w_bn_ref[...], preferred_element_type=jnp.float32)
    inv_b = 1.0 / h.shape[0]
    s1 = jnp.sum(h, axis=0, keepdims=True)
    s2 = jnp.sum(h * h, axis=0, keepdims=True)
    mean = s1 * inv_b
    var = jnp.maximum(s2 * inv_b - mean * mean, 0.0)  # biased var (PyTorch BN)
    gamma = bn_aff_ref[0:1, :]
    beta = bn_aff_ref[1:2, :]
    scale = gamma * jax.lax.rsqrt(var + BN_EPS)
    shift = beta - mean * scale
    return h * scale + shift


def rule_predictor_mlp_kernel(x_ref, w_bn_ref, bn_aff_ref,
                              w_cls_ref, b_cls_ref, out_ref):
    h = _bn_block(x_ref, w_bn_ref, bn_aff_ref)
    logits = jnp.dot(h.astype(jnp.bfloat16), w_cls_ref[...],
                     preferred_element_type=jnp.float32) + b_cls_ref[...]
    # Softmax(dim=-1); padded columns carry bias -1e30 -> exp == 0, so the
    # normalization over the padded 128-wide row equals softmax over R+1.
    m = jnp.max(logits, axis=-1, keepdims=True)
    e = jnp.exp(logits - m)
    denom = jnp.sum(e, axis=-1, keepdims=True)
    out_ref[...] = e * pl.reciprocal(denom, approx=True)


def rule_predictor_attn_kernel(x_ref, w_bn_ref, bn_aff_ref,
                               w_att_ref, b_att_ref, out_ref):
    h = _bn_block(x_ref, w_bn_ref, bn_aff_ref)
    # Folded attention: scores = (h @ w_q + b_q) @ K^T / sqrt(H)
    #                          =  h @ W' + b'     (W', b' precomputed outside)
    out_ref[...] = (jnp.dot(h.astype(jnp.bfloat16), w_att_ref[...],
                            preferred_element_type=jnp.float32)
                    + b_att_ref[...])


# ---------------------------------------------------------------------------
# Parameter construction / preparation
# ---------------------------------------------------------------------------
def init_params(hidden_size, rel_num, key):
    """Deterministic parameter init mimicking nn.Linear / nn.Embedding defaults."""
    ks = jax.random.split(key, 10)

    def linear(kw, kb, fan_in, fan_out):
        bound = 1.0 / math.sqrt(fan_in)
        w = jax.random.uniform(kw, (fan_in, fan_out), jnp.float32, -bound, bound)
        b = jax.random.uniform(kb, (1, fan_out), jnp.float32, -bound, bound)
        return w, b

    p = {}
    p["w_bn"], p["b_bn"] = linear(ks[0], ks[1], hidden_size, hidden_size)
    p["w_q"], p["b_q"] = linear(ks[2], ks[3], hidden_size, hidden_size)
    p["w_k"], p["b_k"] = linear(ks[4], ks[5], hidden_size, hidden_size)
    p["w_cls"], p["b_cls"] = linear(ks[6], ks[7], hidden_size, rel_num + 1)
    # BatchNorm1d affine params: weight=1, bias=0 (PyTorch default)
    p["gamma"] = jnp.ones((1, hidden_size), jnp.float32)
    p["beta"] = jnp.zeros((1, hidden_size), jnp.float32)
    # Embedding(rel_num + 1, hidden_size) ~ N(0, 1)
    p["emb"] = jax.random.normal(ks[8], (rel_num + 1, hidden_size), jnp.float32)
    # NOTE: fc_v exists in the PyTorch module but is never used in forward().
    return p


def prepare_kernel_params(params, hidden_size, rel_num):
    """One-time: pad output width lane-dense, fold attention key path, cast bf16."""
    n_out = rel_num + 1
    np_ = _round_up(n_out, LANES)
    dn = np_ - n_out

    prep = {"hidden": hidden_size, "n_out": n_out, "out_padded": np_}

    # bn_linear weight only; b_bn is mathematically cancelled by BN mean subtraction.
    prep["w_bn"] = params["w_bn"].astype(jnp.bfloat16)                    # [H, H]
    # Pack gamma/beta into one input (fewer tiny DMAs per call).
    prep["bn_aff"] = jnp.concatenate([params["gamma"], params["beta"]], 0)  # [2, H]

    # classifier; padded bias columns get -1e30 so softmax zeroes them out
    prep["w_cls"] = jnp.pad(params["w_cls"], ((0, 0), (0, dn))).astype(jnp.bfloat16)
    prep["b_cls"] = jnp.pad(params["b_cls"], ((0, 0), (0, dn)),
                            constant_values=NEG_INF)

    # attention fold: K = emb @ w_k + b_k; W' = w_q @ K^T / sqrt(H); b' = b_q @ K^T / sqrt(H)
    key_mat = params["emb"] @ params["w_k"] + params["b_k"]               # [R+1, H]
    inv_sqrt_h = 1.0 / math.sqrt(hidden_size)
    w_att = (params["w_q"] @ key_mat.T) * inv_sqrt_h                      # [H, R+1]
    b_att = (params["b_q"] @ key_mat.T) * inv_sqrt_h                      # [1, R+1]
    prep["w_att"] = jnp.pad(w_att, ((0, 0), (0, dn))).astype(jnp.bfloat16)
    prep["b_att"] = jnp.pad(b_att, ((0, 0), (0, dn)))
    return prep


# ---------------------------------------------------------------------------
# Forward wrapper
# ---------------------------------------------------------------------------
def rule_predictor_forward(x, prep, mode="mlp"):
    """x: [B, H] (one BN group) or [G, B, H] (G independent forwards / BN groups)."""
    single = (x.ndim == 2)
    x3 = x[None] if single else x
    grp, batch, hidden = x3.shape
    assert hidden == prep["hidden"]
    np_, n_out = prep["out_padded"], prep["n_out"]

    if mode == "mlp":
        kernel = rule_predictor_mlp_kernel
        w_out, b_out = prep["w_cls"], prep["b_cls"]
    else:
        kernel = rule_predictor_attn_kernel
        w_out, b_out = prep["w_att"], prep["b_att"]

    const2d = lambda g: (0, 0)   # weights: constant block index -> VMEM-resident
    in_specs = [
        pl.BlockSpec((None, batch, hidden), lambda g: (g, 0, 0)),   # x (per group)
        pl.BlockSpec((hidden, hidden), const2d),                     # w_bn
        pl.BlockSpec((2, hidden), const2d),                          # gamma|beta
        pl.BlockSpec((hidden, np_), const2d),                        # w_cls / w_att
        pl.BlockSpec((1, np_), const2d),                             # b_cls / b_att
    ]
    out_spec = pl.BlockSpec((None, batch, np_), lambda g: (g, 0, 0))

    flops = grp * (2 * batch * hidden * hidden
                   + 2 * batch * hidden * np_
                   + 12 * batch * hidden)
    transcendentals = grp * (batch * np_ + hidden + batch)  # exp + rsqrt + recip
    bytes_accessed = (x3.size * 4
                      + prep["w_bn"].size * 2 + prep["bn_aff"].size * 4
                      + w_out.size * 2 + b_out.size * 4
                      + grp * batch * np_ * 4)

    out = pl.pallas_call(
        kernel,
        out_shape=jax.ShapeDtypeStruct((grp, batch, np_), jnp.float32),
        grid=(grp,),
        in_specs=in_specs,
        out_specs=out_spec,
        compiler_params=pltpu.CompilerParams(
            dimension_semantics=("parallel",),       # v7x: shard groups across TCs
            vmem_limit_bytes=32 * 1024 * 1024),
        cost_estimate=pl.CostEstimate(
            flops=flops,
            transcendentals=transcendentals,
            bytes_accessed=bytes_accessed),
    )(x3, prep["w_bn"], prep["bn_aff"], w_out, b_out)

    out = out[..., :n_out]                # slice away lane padding outside kernel
    return out[0] if single else out


# ---------------------------------------------------------------------------
# Pure-JAX reference (PyTorch-equivalent math, f32) for a light sanity check
# ---------------------------------------------------------------------------
def reference_forward(x, params, mode="mlp"):
    h = x @ params["w_bn"] + params["b_bn"]
    mean = jnp.mean(h, axis=0, keepdims=True)
    var = jnp.mean((h - mean) ** 2, axis=0, keepdims=True)
    h = (h - mean) / jnp.sqrt(var + BN_EPS) * params["gamma"] + params["beta"]
    if mode == "mlp":
        logits = h @ params["w_cls"] + params["b_cls"]
        return jax.nn.softmax(logits, axis=-1)
    key_mat = params["emb"] @ params["w_k"] + params["b_k"]
    q = h @ params["w_q"] + params["b_q"]
    return (q @ key_mat.T) / math.sqrt(h.shape[1])


# ---------------------------------------------------------------------------
# Demo
# ---------------------------------------------------------------------------
if __name__ == "__main__":
    hidden_size = 32
    rel_num = 7          # -> rel_num + 1 = 8 output classes
    batch = 8            # BN uses the full (per-group) batch
    groups = 4           # independent micro-batches amortizing weight DMA

    key = jax.random.PRNGKey(0)
    k_x, k_g, k_p = jax.random.split(key, 3)
    x = jax.random.normal(k_x, (batch, hidden_size), jnp.float32)
    xg = jax.random.normal(k_g, (groups, batch, hidden_size), jnp.float32)

    params = init_params(hidden_size, rel_num, k_p)
    prep = prepare_kernel_params(params, hidden_size, rel_num)

    # default forward path: mode='mlp' (softmax probabilities)
    probs = jax.block_until_ready(rule_predictor_forward(x, prep, mode="mlp"))
    assert probs.shape == (batch, rel_num + 1)
    assert bool(jnp.all(jnp.isfinite(probs)))
    ref_p = reference_forward(x, params, mode="mlp")
    assert float(jnp.max(jnp.abs(probs - ref_p))) < 5e-2          # bf16 MXU tolerance
    assert float(jnp.max(jnp.abs(jnp.sum(probs, axis=-1) - 1.0))) < 1e-2

    # attention path (transformer_attention), folded key projection
    scores = jax.block_until_ready(
        rule_predictor_forward(x, prep, mode="attention"))
    assert scores.shape == (batch, rel_num + 1)
    assert bool(jnp.all(jnp.isfinite(scores)))
    ref_s = reference_forward(x, params, mode="attention")
    assert float(jnp.max(jnp.abs(scores - ref_s))) < 2e-1

    # grouped call: grid over G independent BN groups, weights resident in VMEM
    probs_g = jax.block_until_ready(rule_predictor_forward(xg, prep, mode="mlp"))
    assert probs_g.shape == (groups, batch, rel_num + 1)
    assert bool(jnp.all(jnp.isfinite(probs_g)))

    print("KERNEL_OK")
</pallas_src>

<mosaic_0001>
module attributes {stable_mosaic.version = 11 : i64} {
  func.func @rule_predictor_mlp_kernel(%arg0: i32, %arg1: memref<1x8x32xf32, #tpu.memory_space<vmem>>, %arg2: memref<32x32xbf16, #tpu.memory_space<vmem>>, %arg3: memref<2x32xf32, #tpu.memory_space<vmem>>, %arg4: memref<32x128xbf16, #tpu.memory_space<vmem>>, %arg5: memref<1x128xf32, #tpu.memory_space<vmem>>, %arg6: memref<1x8x128xf32, #tpu.memory_space<vmem>>) attributes {dimension_semantics = [#tpu.dimension_semantics<parallel>], iteration_bounds = array<i64: 1>, scalar_prefetch = 0 : i64, scratch_operands = 0 : i64, tpu.core_type = #tpu.core_type<tc>, window_params = [{transform_indices = @transform_0, window_bounds = array<i64: 1, 8, 32>}, {pipeline_mode = #tpu.pipeline_mode<synchronous>, transform_indices = @transform_1, window_bounds = array<i64: 32, 32>}, {pipeline_mode = #tpu.pipeline_mode<synchronous>, transform_indices = @transform_2, window_bounds = array<i64: 2, 32>}, {pipeline_mode = #tpu.pipeline_mode<synchronous>, transform_indices = @transform_3, window_bounds = array<i64: 32, 128>}, {pipeline_mode = #tpu.pipeline_mode<synchronous>, transform_indices = @transform_4, window_bounds = array<i64: 1, 128>}, {transform_indices = @transform_5, window_bounds = array<i64: 1, 8, 128>}]} {
    %c0 = arith.constant 0 : index
    %c0_0 = arith.constant 0 : index
    %c0_1 = arith.constant 0 : index
    %0 = vector.load %arg1[%c0, %c0_0, %c0_1] : memref<1x8x32xf32, #tpu.memory_space<vmem>>, vector<1x8x32xf32>
    %1 = vector.shape_cast %0 : vector<1x8x32xf32> to vector<8x32xf32>
    %2 = arith.truncf %1 : vector<8x32xf32> to vector<8x32xbf16>
    %c0_2 = arith.constant 0 : index
    %c0_3 = arith.constant 0 : index
    %3 = vector.load %arg2[%c0_2, %c0_3] : memref<32x32xbf16, #tpu.memory_space<vmem>>, vector<32x32xbf16>
    %cst = arith.constant dense<0.000000e+00> : vector<8x32xf32>
    %4 = tpu.matmul %2, %3, %cst {dimension_numbers = #tpu.dot_dimension_numbers<[1], [0], [0], [1], [0, 0, 1, 1], [], []>} : vector<8x32xbf16>, vector<32x32xbf16>, vector<8x32xf32> -> vector<8x32xf32>
    %cst_4 = arith.constant dense<0.000000e+00> : vector<32xf32>
    %5 = vector.multi_reduction <add>, %4, %cst_4 [0] : vector<8x32xf32> to vector<32xf32>
    %6 = vector.shape_cast %5 : vector<32xf32> to vector<1x32xf32>
    %7 = arith.mulf %4, %4 : vector<8x32xf32>
    %cst_5 = arith.constant dense<0.000000e+00> : vector<32xf32>
    %8 = vector.multi_reduction <add>, %7, %cst_5 [0] : vector<8x32xf32> to vector<32xf32>
    %9 = vector.shape_cast %8 : vector<32xf32> to vector<1x32xf32>
    %cst_6 = arith.constant 1.250000e-01 : f32
    %10 = vector.broadcast %cst_6 : f32 to vector<1x32xf32>
    %11 = arith.mulf %6, %10 : vector<1x32xf32>
    %cst_7 = arith.constant 1.250000e-01 : f32
    %12 = vector.broadcast %cst_7 : f32 to vector<1x32xf32>
    %13 = arith.mulf %9, %12 : vector<1x32xf32>
    %14 = arith.mulf %11, %11 : vector<1x32xf32>
    %15 = arith.subf %13, %14 : vector<1x32xf32>
    %cst_8 = arith.constant 0.000000e+00 : f32
    %16 = vector.broadcast %cst_8 : f32 to vector<1x32xf32>
    %17 = arith.maximumf %15, %16 : vector<1x32xf32>
    %c0_9 = arith.constant 0 : index
    %c0_10 = arith.constant 0 : index
    %18 = vector.load %arg3[%c0_9, %c0_10] : memref<2x32xf32, #tpu.memory_space<vmem>>, vector<1x32xf32>
    %c1 = arith.constant 1 : index
    %c0_11 = arith.constant 0 : index
    %19 = vector.load %arg3[%c1, %c0_11] : memref<2x32xf32, #tpu.memory_space<vmem>>, vector<1x32xf32>
    %cst_12 = arith.constant 9.99999974E-6 : f32
    %20 = vector.broadcast %cst_12 : f32 to vector<1x32xf32>
    %21 = arith.addf %17, %20 : vector<1x32xf32>
    %22 = math.rsqrt %21 : vector<1x32xf32>
    %23 = arith.mulf %18, %22 : vector<1x32xf32>
    %24 = arith.mulf %11, %23 : vector<1x32xf32>
    %25 = arith.subf %19, %24 : vector<1x32xf32>
    %26 = vector.broadcast %23 : vector<1x32xf32> to vector<8x32xf32>
    %27 = arith.mulf %4, %26 : vector<8x32xf32>
    %28 = vector.broadcast %25 : vector<1x32xf32> to vector<8x32xf32>
    %29 = arith.addf %27, %28 : vector<8x32xf32>
    %30 = arith.truncf %29 : vector<8x32xf32> to vector<8x32xbf16>
    %c0_13 = arith.constant 0 : index
    %c0_14 = arith.constant 0 : index
    %31 = vector.load %arg4[%c0_13, %c0_14] : memref<32x128xbf16, #tpu.memory_space<vmem>>, vector<32x128xbf16>
    %cst_15 = arith.constant dense<0.000000e+00> : vector<8x128xf32>
    %32 = tpu.matmul %30, %31, %cst_15 {dimension_numbers = #tpu.dot_dimension_numbers<[1], [0], [0], [1], [0, 0, 1, 1], [], []>} : vector<8x32xbf16>, vector<32x128xbf16>, vector<8x128xf32> -> vector<8x128xf32>
    %c0_16 = arith.constant 0 : index
    %c0_17 = arith.constant 0 : index
    %33 = vector.load %arg5[%c0_16, %c0_17] : memref<1x128xf32, #tpu.memory_space<vmem>>, vector<1x128xf32>
    %34 = vector.broadcast %33 : vector<1x128xf32> to vector<8x128xf32>
    %35 = arith.addf %32, %34 : vector<8x128xf32>
    %cst_18 = arith.constant dense<0xFF800000> : vector<8xf32>
    %36 = vector.multi_reduction <maximumf>, %35, %cst_18 [1] : vector<8x128xf32> to vector<8xf32>
    %37 = vector.shape_cast %36 : vector<8xf32> to vector<8x1xf32>
    %38 = vector.broadcast %37 : vector<8x1xf32> to vector<8x128xf32>
    %39 = arith.subf %35, %38 : vector<8x128xf32>
    %40 = math.exp %39 : vector<8x128xf32>
    %cst_19 = arith.constant dense<0.000000e+00> : vector<8xf32>
    %41 = vector.multi_reduction <add>, %40, %cst_19 [1] : vector<8x128xf32> to vector<8xf32>
    %42 = vector.shape_cast %41 : vector<8xf32> to vector<8x1xf32>
    %43 = tpu.reciprocal %42 {approx = true} : vector<8x1xf32> -> vector<8x1xf32>
    %44 = vector.broadcast %43 : vector<8x1xf32> to vector<8x128xf32>
    %45 = arith.mulf %40, %44 : vector<8x128xf32>
    %c0_20 = arith.constant 0 : index
    %c0_21 = arith.constant 0 : index
    %c0_22 = arith.constant 0 : index
    %46 = vector.load %arg6[%c0_20, %c0_21, %c0_22] : memref<1x8x128xf32, #tpu.memory_space<vmem>>, vector<1x8x128xf32>
    %47 = vector.shape_cast %46 : vector<1x8x128xf32> to vector<8x128xf32>
    %48 = vector.shape_cast %45 : vector<8x128xf32> to vector<1x8x128xf32>
    tpu.vector_store %arg6[%c0_20, %c0_21, %c0_22], %48 {strides = array<i32>} : memref<1x8x128xf32, #tpu.memory_space<vmem>>, vector<1x8x128xf32>,
    return
  }
  func.func @transform_0(%arg0: i32) -> (i32, i32, i32) {
    %c0_i32 = arith.constant 0 : i32
    %c0_i32_0 = arith.constant 0 : i32
    %c0_i32_1 = arith.constant 0 : i32
    return %arg0, %c0_i32, %c0_i32_0 : i32, i32, i32
  }
  func.func @transform_1(%arg0: i32) -> (i32, i32) {
    %c0_i32 = arith.constant 0 : i32
    %c0_i32_0 = arith.constant 0 : i32
    %c0_i32_1 = arith.constant 0 : i32
    return %c0_i32, %c0_i32_0 : i32, i32
  }
  func.func @transform_2(%arg0: i32) -> (i32, i32) {
    %c0_i32 = arith.constant 0 : i32
    %c0_i32_0 = arith.constant 0 : i32
    %c0_i32_1 = arith.constant 0 : i32
    return %c0_i32, %c0_i32_0 : i32, i32
  }
  func.func @transform_3(%arg0: i32) -> (i32, i32) {
    %c0_i32 = arith.constant 0 : i32
    %c0_i32_0 = arith.constant 0 : i32
    %c0_i32_1 = arith.constant 0 : i32
    return %c0_i32, %c0_i32_0 : i32, i32
  }
  func.func @transform_4(%arg0: i32) -> (i32, i32) {
    %c0_i32 = arith.constant 0 : i32
    %c0_i32_0 = arith.constant 0 : i32
    %c0_i32_1 = arith.constant 0 : i32
    return %c0_i32, %c0_i32_0 : i32, i32
  }
  func.func @transform_5(%arg0: i32) -> (i32, i32, i32) {
    %c0_i32 = arith.constant 0 : i32
    %c0_i32_0 = arith.constant 0 : i32
    %c0_i32_1 = arith.constant 0 : i32
    return %arg0, %c0_i32, %c0_i32_0 : i32, i32, i32
  }
}

</mosaic_0001>

<bundles_post_ra>
// kernel: tpu_custom_call.1
= control target key start
LH: loop header
LB: loop body
LE: loop exit
PB: predicated region body
PF: predicated region fallthrough
CT: control target
= control target key end

     0   :  { %10 = vsyncpa [#allocation3], 0  ;;  %s449_s0 = inlined_call_operand.hbm [shape: f32[1,8,32], index: 0, kind: input, shape index: {}]   ;;  %s450_s1 = inlined_call_operand.hbm [shape: bf16[32,32], index: 1, kind: input, shape index: {}]   ;;  %s451_s2 = inlined_call_operand.vmem [shape: f32[2,32], index: 2, kind: input, shape index: {}]   ;;  %s452_s3 = inlined_call_operand.hbm [shape: bf16[32,128], index: 3, kind: input, shape index: {}]   ;;  %s453_s4 = inlined_call_operand.vmem [shape: f32[1,128], index: 4, kind: input, shape index: {}]   ;;  %s454_s5 = inlined_call_operand.hbm [shape: f32[1,8,128], index: 5, kind: output, shape index: {}]  }
   0x1   :  { %11 = vsyncpa [#allocation6], 0 }
   0x2   :  { %12 = vsyncpa [#allocation4], 0  ;;  %s386_s18 = smov [#allocation5]  }
   0x3   :  { %s28_s19 = sshll.u32 %s386_s18, 4  ;;  %s29_s19 = int_to_ptr.vmem [resolvable:$true] %s28_s19 }
   0x4   :  { %s308_s20 = scalar_lea.vmem %s29_s19, 256  ;;  %p313_p1 = scmp.lt.s32.totalorder %s29_s19, %s29_s19 }
   0x5   :  { %p309_p0 = scmp.ne.s32.totalorder %s29_s19, %s308_s20  ;;  %p314_p2 = scmp.lt.s32.totalorder %s308_s20, %s308_s20 }
   0x7   :  { %p315_p3 = por %p314_p2, %p313_p1 }
   0x9   :  { %p316_p4 = pnand %p315_p3, %p309_p0 }
   0xb   :  { %319 = shalt.err (!%p316_p4)
}
   0xc   :  { %s387_s21 = smov 64   ;;  %s388_s22 = smov 4  }
   0xd   :  { %34 = dma.hbm_to_vmem [thread:$0]  %s450_s1, 256, %s29_s19, [#allocation6], %s387_s21, %s387_s21, %s388_s22  }
   0xe   :  { %s389_s25 = smov [#allocation2]   ;;  %s390_s27 = smov [#allocation7]  }
   0xf   :  { %s19_s26 = sshll.u32 %s389_s25, 4  ;;  %s42_s28 = sshll.u32 %s390_s27, 4  ;;  %s20_s26 = int_to_ptr.vmem [resolvable:$true] %s19_s26  ;;  %s43_s28 = int_to_ptr.vmem [resolvable:$true] %s42_s28 }
  0x10   :  { %s328_s29 = scalar_lea.vmem %s20_s26, 128  ;;  %p333_p6 = scmp.lt.s32.totalorder %s20_s26, %s20_s26 }
  0x11   :  { %p329_p5 = scmp.ne.s32.totalorder %s20_s26, %s328_s29  ;;  %p334_p7 = scmp.lt.s32.totalorder %s328_s29, %s328_s29 }
  0x13   :  { %p335_p8 = por %p334_p7, %p333_p6 }
  0x15   :  { %p336_p9 = pnand %p335_p8, %p329_p5 }
  0x17   :  { %339 = shalt.err (!%p336_p9)
}
  0x18   :  { %22 = dma.hbm_to_vmem [thread:$0]  %s449_s0, 128, %s20_s26, [#allocation3]  }
  0x19   :  { %s348_s7 = scalar_lea.vmem %s43_s28, 256  ;;  %p353_p11 = scmp.lt.s32.totalorder %s43_s28, %s43_s28 }
  0x1a   :  { %p349_p10 = scmp.ne.s32.totalorder %s43_s28, %s348_s7  ;;  %p354_p12 = scmp.lt.s32.totalorder %s348_s7, %s348_s7 }
  0x1c   :  { %p355_p13 = por %p354_p12, %p353_p11 }
  0x1e   :  { %p356_p0 = pnand %p355_p13, %p349_p10 }
  0x20   :  { %359 = shalt.err (!%p356_p0)
}
  0x21   :  { %48 = dma.hbm_to_vmem [thread:$0]  %s452_s3, 256, %s43_s28, [#allocation6], %s387_s21, %s387_s21, %s388_s22  }
  0x22   :  { %380 = dma.done.wait [#allocation3], 128  }
  0x23   :  { %381 = vsyncadd [#allocation3], 4294967168 }
  0x24   :  { %382 = dma.done.wait [#allocation6], 512  }
  0x25   :  { %383 = vsyncadd [#allocation6], 4294966784  ;;  %v391_v0 = vmov 0.0   ;;  %vm392_vm0 = vmmov 0   ;;  %v290_v1 = vld [vmem:[#allocation5 + $0x8] sm:$0xff]   ;;  %v291_v2 = vld [vmem:[#allocation5] sm:$0xff]   ;;  %v150_v32 = vlaneseq }
  0x26   :  { %266 = vmatprep.subr.bf16.mxu0 %v391_v0  ;;  %270 = vmatprep.mubr.msk.bf16.mxu0 %vm392_vm0, %v391_v0  ;;  %v61_v3 = vld [vmem:[#allocation2] sm:$0xff]  ;;  %vm79_vm1 = vcmask 261120   ;;  %v293_v6 = vld [vmem:[#allocation7] sm:$0xff]  }
  0x27   :  { %274 = vmatprep.subr.bf16.mxu1 %v391_v0  ;;  %278 = vmatprep.mubr.msk.bf16.mxu1 %vm392_vm0, %v391_v0  ;;  %v62_v4 = vpack.c.bf16 %v61_v3, %v61_v3  ;;  %v292_v5 = vld [vmem:[#allocation7 + $0x8] sm:$0xff]   ;;  %v151_v33 = vshrl.u32 %v150_v32, 7 }
  0x28   :  { %267 = vmatpush3.bf16.msra.mxu0 %v290_v1  ;;  %275 = vmatpush3.bf16.msra.mxu1 %v292_v5  ;;  %v143_v34 = vld [vmem:[%s451_s2] sm:$0x1]  ;;  %v144_v38 = vld [vmem:[%s451_s2 + $0x1] sm:$0x1]  ;;  %s393_s2 = smov [#allocation8]  }
  0x29   :  { %268 = vmatprep.subr.bf16.mxu0 %v391_v0  ;;  %276 = vmatprep.subr.bf16.mxu1 %v391_v0  ;;  %v152_v35 = vsub.s32 0, %v151_v33  ;;  %v256_v46 = vld [vmem:[%s453_s4] ss:$0 sm:$0xff]  ;;  %s243_s13 = sshll.u32 %s393_s2, 4  ;;  %s244_s13 = int_to_ptr.vmem [resolvable:$true] %s243_s13 }
  0x2a   :  { %s360_s4 = scalar_lea.vmem %s244_s13, 128  ;;  %p365_p2 = scmp.lt.s32.totalorder %s244_s13, %s244_s13 }
  0x2b   :  { %p361_p1 = scmp.ne.s32.totalorder %s244_s13, %s360_s4  ;;  %p366_p3 = scmp.lt.s32.totalorder %s360_s4, %s360_s4 }
  0x2c   :  { %269 = vmatpush3.bf16.msra.mxu0 %v291_v2  ;;  %277 = vmatpush3.bf16.msra.mxu1 %v293_v6 }
  0x2d   :  { %p367_p4 = por %p366_p3, %p365_p2 }
  0x2f   :  { %271 = vmatmul.mubr.msk.bf16.vlgmr.msra.gmra.mxu0 %vm79_vm1, %v62_v4  ;;  %p368_p5 = pnand %p367_p4, %p361_p1 }
  0xef   :  { %v117_v7 = vpop.f32.mrf.mxu0 }
  0xf0   :  { %v123_v8 = vsel %vm79_vm1, %v117_v7, 0.0  ;;  %v130_v9 = vmul.f32 %v117_v7, %v117_v7 }
  0xf1   :  { %v124_v10 = vrot.slane %v123_v8, 4  ;;  %v272_v11 = vpop.f32.mrf.mxu0 }
  0xf2   :  { %v131_v12 = vsel %vm79_vm1, %v130_v9, 0.0 }
  0xf3   :  { %v125_v13 = vadd.f32 %v124_v10, %v123_v8  ;;  %v132_v14 = vrot.slane %v131_v12, 4  ;;  %v120_v15 = vpop.f32.mrf.mxu0 }
  0xf5   :  { %v126_v16 = vrot.slane %v125_v13, 2  ;;  %v133_v17 = vadd.f32 %v132_v14, %v131_v12  ;;  %v273_v18 = vpop.f32.mrf.mxu0 }
  0xf7   :  { %v127_v19 = vadd.f32 %v126_v16, %v125_v13  ;;  %v134_v20 = vrot.slane %v133_v17, 2 }
  0xf9   :  { %v128_v21 = vrot.slane %v127_v19, 1  ;;  %v135_v22 = vadd.f32 %v134_v20, %v133_v17 }
  0xfb   :  { %v129_v23 = vadd.f32 %v128_v21, %v127_v19  ;;  %v136_v24 = vrot.slane %v135_v22, 1 }
  0xfd   :  { %v137_v25 = vadd.f32 %v136_v24, %v135_v22  ;;  %v138_v26 = vmul.f32 0.125, %v129_v23 }
  0xff   :  { %v139_v27 = vmul.f32 0.125, %v137_v25  ;;  %v140_v28 = vmul.f32 %v138_v26, %v138_v26 }
 0x101   :  { %v141_v29 = vsub.f32 %v139_v27, %v140_v28 }
 0x103   :  { %v142_v30 = vmax.f32 %v141_v29, 0.0 }
 0x105   :  { %v145_v31 = vadd.f32 1e-05, %v142_v30 }
 0x107   :  { %294 = vrsqrt.f32 %v145_v31 }
 0x114   :  { %v295_v36 = vpop.eup %294 }
 0x115   :  { %v147_v37 = vmul.f32 %v295_v36, %v143_v34 }
 0x117   :  { %v148_v39 = vmul.f32 %v147_v37, %v138_v26  ;;  %v153_v40 = vrot.slane %v147_v37, %v152_v35 }
 0x119   :  { %v149_v41 = vsub.f32 %v144_v38, %v148_v39  ;;  %v154_v42 = vmul.f32 %v153_v40, %v117_v7 }
 0x11b   :  { %v158_v43 = vrot.slane %v149_v41, %v152_v35 }
 0x11d   :  { %v159_v44 = vadd.f32 %v158_v43, %v154_v42 }
 0x11f   :  { %v160_v45 = vpack.c.bf16 %v159_v44, %v159_v44 }
 0x121   :  { %279 = vmatmul.mubr.msk.bf16.vlgmr.msra.gmra.mxu1 %vm79_vm1, %v160_v45 }
 0x1e1   :  { %v221_v47 = vpop.f32.mrf.mxu1 }
 0x1e2   :  { %v222_v48 = vadd.f32 %v256_v46, %v221_v47 }
 0x1e3   :  { %v280_v49 = vpop.f32.mrf.mxu1 }
 0x1e4   :  { %227 = vmax.xlane.f32.xlu0 %v222_v48 }
 0x1e5   :  { %v224_v50 = vpop.f32.mrf.mxu1 }
 0x1e7   :  { %v281_v51 = vpop.f32.mrf.mxu1 }
 0x26d   :  { %v228_v52 = vpop.xlane.xlu0 %227 }
 0x26e   :  { %v229_v53 = vsub.f32 %v222_v48, %v228_v52 }
 0x270   :  { %v230_v54 = vmul.f32 1.442695, %v229_v53 }
 0x272   :  { %296 = vpow2.f32 %v230_v54 }
 0x27f   :  { %v297_v55 = vpop.eup %296 }
 0x280   :  { %232 = vadd.xlane.f32.xlu0 %v297_v55 }
 0x309   :  { %v233_v56 = vpop.xlane.xlu0 %232 }
 0x30a   :  { %298 = vrcp.f32 %v233_v56 }
 0x317   :  { %v299_v57 = vpop.eup %298 }
 0x318   :  { %v235_v58 = vmul.f32 %v299_v57, %v297_v55 }
 0x31a   :  { %236 = vst [vmem:[#allocation8] sm:$0xff] %v235_v58 }
 0x31b   :  { %371 = shalt.err (!%p368_p5)
}
 0x31c   :  { %246 = dma.vmem_to_hbm [thread:$0]  %s244_s13, 128, %s454_s5, [#allocation4]  }
 0x31d   :  { %384 = dma.done.wait [#allocation4], 128  }
 0x31e   :  { %385 = vsyncadd [#allocation4], 4294967168 }
 0x31f   :  { %250 = vsyncpa [#allocation3], 1 }
 0x320   :  { %251 = vsyncpa [#allocation6], 1 }
 0x321   :  { %252 = vsyncpa [#allocation4], 1 }

</bundles_post_ra>
